<compile_context>
chip_gen: v7x
topology: tpu7x:2x2x1
jax: 0.10.0
libtpu: 0.0.40
codegen_flags: <defaults>
</compile_context>

<pallas_src>
import functools
import math

import jax
import jax.numpy as jnp
from jax import lax
from jax.experimental import pallas as pl
from jax.experimental.pallas import tpu as pltpu


def _round_up(x, m):
    return (x + m - 1) // m * m


def _attn_kernel(x_ref, w_ref, ctx_ref, a_ref, qkv_ref, *, tq, dp):
    """One grid step = (batch b, q-tile j)."""
    T_pad = qkv_ref.shape[0]
    j = pl.program_id(1)

    # Fused Q/K/V projection for the WHOLE sequence, computed once per batch
    # element (q-tile axis is "arbitrary" => j == 0 runs first; the scratch
    # persists for the remaining tiles of this batch element).
    @pl.when(j == 0)
    def _():
        qkv_ref[...] = jnp.dot(
            x_ref[0], w_ref[...], preferred_element_type=jnp.float32
        )

    q_off = j * tq
    q_start = pl.multiple_of(q_off, tq)

    # 1/sqrt(d_out) is already folded into the Q columns of w_ref.
    q = qkv_ref[pl.ds(q_start, tq), :dp]        # (tq, dp)
    k = qkv_ref[:, dp:2 * dp]                   # (T_pad, dp)
    v = qkv_ref[:, 2 * dp:]                     # (T_pad, dp)

    # Scores: contract the last dims of Q and K directly (no explicit K^T).
    s = lax.dot_general(
        q, k,
        dimension_numbers=(((1,), (1,)), ((), ())),
        preferred_element_type=jnp.float32,
    )                                           # (tq, T_pad)

    # Per-tile causal mask built from the global q-row offset.
    row = q_off + lax.broadcasted_iota(jnp.int32, (tq, T_pad), 0)
    col = lax.broadcasted_iota(jnp.int32, (tq, T_pad), 1)
    s = jnp.where(col <= row, s, -jnp.inf)

    # Row-wise softmax; the diagonal is always unmasked, so the row max is
    # finite and exp(-inf - m) cleanly yields 0 (no NaNs, even on pad rows).
    m = jnp.max(s, axis=-1, keepdims=True)
    e = jnp.exp(s - m)
    denom = jnp.sum(e, axis=-1, keepdims=True)
    inv = pl.reciprocal(denom, approx=False)    # (tq, 1); exact, broadcast-mul
    a = e * inv

    a_ref[0] = a.astype(a_ref.dtype)
    ctx_ref[0] = jnp.dot(
        a.astype(v.dtype), v, preferred_element_type=jnp.float32
    ).astype(ctx_ref.dtype)


def masked_self_attention(x, wq_t, wk_t, wv_t, *, q_tile=128):
    """x: (B, T, d_in); w*_t: (d_in, d_out) (torch Linear weight, transposed).

    q_tile: query-tile size (rounded to a multiple of 8).  128 matches the
    MXU natively; 256 can be better on v6e/v7x for large T.
    """
    B, T, d_in = x.shape
    d_out = wq_t.shape[1]
    out_dtype = x.dtype

    # Fold the 1/sqrt(d_out) score scale into Wq (algebraically identical to
    # dividing the scores by sqrt(d_out) as in the torch module).
    scale = 1.0 / math.sqrt(float(d_out))

    # Lane-dense padding: pad d_out to a multiple of 128 so the in-kernel
    # Q/K/V slices are lane-tile aligned and the ctx store is unmasked.
    dp = _round_up(d_out, 128)
    pad_c = dp - d_out

    def _pad_w(w):
        return jnp.pad(w, ((0, 0), (0, pad_c))) if pad_c else w

    # Fused (and pre-scaled) QKV weight: (d_in, 3*dp).
    w_qkv = jnp.concatenate(
        [_pad_w(wq_t * scale), _pad_w(wk_t), _pad_w(wv_t)], axis=1
    )

    # q tiling: 8-aligned tile that divides the (padded) sequence length.
    q_tile = max(8, _round_up(q_tile, 8))
    tq = min(q_tile, _round_up(T, 8))
    T_pad = _round_up(T, tq)
    nq = T_pad // tq

    x_p = jnp.pad(x, ((0, 0), (0, T_pad - T), (0, 0))) if T_pad != T else x

    kernel = functools.partial(_attn_kernel, tq=tq, dp=dp)

    ctx_p, a_p = pl.pallas_call(
        kernel,
        out_shape=(
            jax.ShapeDtypeStruct((B, T_pad, dp), out_dtype),     # contexts (padded)
            jax.ShapeDtypeStruct((B, T_pad, T_pad), out_dtype),  # attention A (padded)
        ),
        grid_spec=pltpu.PrefetchScalarGridSpec(
            num_scalar_prefetch=0,
            grid=(B, nq),
            in_specs=[
                # Full sequence for this batch element; the block index is the
                # same for every q tile, so it is DMA'd once per batch element.
                pl.BlockSpec((1, T_pad, d_in), lambda b, j: (b, 0, 0)),
                # Fused pre-scaled QKV weight, resident for the whole kernel.
                pl.BlockSpec((d_in, 3 * dp), lambda b, j: (0, 0)),
            ],
            out_specs=[
                pl.BlockSpec((1, tq, dp), lambda b, j: (b, j, 0)),
                pl.BlockSpec((1, tq, T_pad), lambda b, j: (b, j, 0)),
            ],
            # Per-batch fused QKV projection (Q pre-scaled), filled at j == 0.
            scratch_shapes=[pltpu.VMEM((T_pad, 3 * dp), jnp.float32)],
        ),
        compiler_params=pltpu.CompilerParams(
            # Batch axis may be sharded across TensorCores; the q-tile axis
            # must stay sequential because the QKV scratch is filled at j == 0.
            dimension_semantics=("parallel", "arbitrary"),
        ),
    )(x_p, w_qkv)

    # Strip the lane / sequence padding.
    return ctx_p[:, :T, :d_out], a_p[:, :T, :T]


def _reference(x, wq_t, wk_t, wv_t):
    d_out = wq_t.shape[1]
    scale = 1.0 / math.sqrt(float(d_out))
    q = x @ (wq_t * scale)
    k = x @ wk_t
    v = x @ wv_t
    s = jnp.einsum("btd,bsd->bts", q, k)
    T = x.shape[1]
    mask = jnp.tril(jnp.ones((T, T), dtype=bool))
    s = jnp.where(mask[None], s, -jnp.inf)
    a = jax.nn.softmax(s, axis=-1)
    ctx = jnp.einsum("bts,bsd->btd", a, v)
    return ctx, a


if __name__ == "__main__":
    root = jax.random.PRNGKey(0)

    def run_case(key, B, T, d_in, d_out, q_tile):
        kx, kq, kk, kv = jax.random.split(key, 4)
        x = jax.random.normal(kx, (B, T, d_in), dtype=jnp.float32)
        # torch.nn.Linear weights are (d_out, d_in); we keep them transposed.
        bound = 1.0 / math.sqrt(float(d_in))
        wq = jax.random.uniform(kq, (d_in, d_out), jnp.float32, -bound, bound)
        wk = jax.random.uniform(kk, (d_in, d_out), jnp.float32, -bound, bound)
        wv = jax.random.uniform(kv, (d_in, d_out), jnp.float32, -bound, bound)

        ctx, A = masked_self_attention(x, wq, wk, wv, q_tile=q_tile)
        jax.block_until_ready((ctx, A))

        ref_ctx, ref_A = _reference(x, wq, wk, wv)
        assert ctx.shape == (B, T, d_out) and A.shape == (B, T, T)
        # Tolerance accommodates the TPU's default (bf16-input) matmul precision.
        assert jnp.allclose(ctx, ref_ctx, atol=5e-3, rtol=5e-3), "context mismatch"
        assert jnp.allclose(A, ref_A, atol=5e-3, rtol=5e-3), "attention mismatch"

    k1, k2 = jax.random.split(root)
    # Module-sized config (single q tile per batch element).
    run_case(k1, B=2, T=8, d_in=32, d_out=32, q_tile=128)
    # Exercise the q-tiled path (nq > 1) plus T- and d_out-padding.
    run_case(k2, B=2, T=20, d_in=32, d_out=32, q_tile=8)

    print("KERNEL_OK")
</pallas_src>

<mosaic_0001>
module attributes {stable_mosaic.version = 11 : i64} {
  func.func @_attn_kernel(%arg0: i32, %arg1: i32, %arg2: memref<1x8x32xf32, #tpu.memory_space<vmem>>, %arg3: memref<32x384xf32, #tpu.memory_space<vmem>>, %arg4: memref<1x8x128xf32, #tpu.memory_space<vmem>>, %arg5: memref<1x8x8xf32, #tpu.memory_space<vmem>>, %arg6: memref<8x384xf32, #tpu.memory_space<vmem>>) attributes {dimension_semantics = [#tpu.dimension_semantics<parallel>, #tpu.dimension_semantics<arbitrary>], iteration_bounds = array<i64: 2, 1>, scalar_prefetch = 0 : i64, scratch_operands = 1 : i64, tpu.core_type = #tpu.core_type<tc>, window_params = [{transform_indices = @transform_0, window_bounds = array<i64: 1, 8, 32>}, {pipeline_mode = #tpu.pipeline_mode<synchronous>, transform_indices = @transform_1, window_bounds = array<i64: 32, 384>}, {transform_indices = @transform_2, window_bounds = array<i64: 1, 8, 128>}, {transform_indices = @transform_3, window_bounds = array<i64: 1, 8, 8>}]} {
    %c0_i32 = arith.constant 0 : i32
    %0 = arith.cmpi eq, %arg1, %c0_i32 : i32
    %1 = arith.extui %0 : i1 to i32
    %c0_i32_0 = arith.constant 0 : i32
    %2 = arith.cmpi ne, %1, %c0_i32_0 : i32
    scf.if %2 {
      %c0_13 = arith.constant 0 : index
      %c0_14 = arith.constant 0 : index
      %c0_15 = arith.constant 0 : index
      %34 = vector.load %arg2[%c0_13, %c0_14, %c0_15] : memref<1x8x32xf32, #tpu.memory_space<vmem>>, vector<1x8x32xf32>
      %35 = vector.shape_cast %34 : vector<1x8x32xf32> to vector<8x32xf32>
      %c0_16 = arith.constant 0 : index
      %c0_17 = arith.constant 0 : index
      %36 = vector.load %arg3[%c0_16, %c0_17] : memref<32x384xf32, #tpu.memory_space<vmem>>, vector<32x384xf32>
      %cst_18 = arith.constant dense<0.000000e+00> : vector<8x384xf32>
      %37 = tpu.matmul %35, %36, %cst_18 {dimension_numbers = #tpu.dot_dimension_numbers<[1], [0], [0], [1], [0, 0, 1, 1], [], []>} : vector<8x32xf32>, vector<32x384xf32>, vector<8x384xf32> -> vector<8x384xf32>
      %c0_19 = arith.constant 0 : index
      %c0_20 = arith.constant 0 : index
      %38 = vector.load %arg6[%c0_19, %c0_20] : memref<8x384xf32, #tpu.memory_space<vmem>>, vector<8x384xf32>
      tpu.vector_store %arg6[%c0_19, %c0_20], %37 {strides = array<i32>} : memref<8x384xf32, #tpu.memory_space<vmem>>, vector<8x384xf32>,
    } else {
    }
    %c8_i32 = arith.constant 8 : i32
    %3 = arith.muli %arg1, %c8_i32 : i32
    %4 = tpu.assume_multiple %3, 8 : i32
    %5 = arith.index_cast %4 : i32 to index
    %c0 = arith.constant 0 : index
    %6 = vector.load %arg6[%5, %c0] : memref<8x384xf32, #tpu.memory_space<vmem>>, vector<8x128xf32>
    %c0_1 = arith.constant 0 : index
    %c128 = arith.constant 128 : index
    %7 = vector.load %arg6[%c0_1, %c128] : memref<8x384xf32, #tpu.memory_space<vmem>>, vector<8x128xf32>
    %c0_2 = arith.constant 0 : index
    %c256 = arith.constant 256 : index
    %8 = vector.load %arg6[%c0_2, %c256] : memref<8x384xf32, #tpu.memory_space<vmem>>, vector<8x128xf32>
    %cst = arith.constant dense<0.000000e+00> : vector<8x8xf32>
    %9 = tpu.matmul %6, %7, %cst {dimension_numbers = #tpu.dot_dimension_numbers<[1], [1], [0], [0], [0, 0, 1, 0], [], []>} : vector<8x128xf32>, vector<8x128xf32>, vector<8x8xf32> -> vector<8x8xf32>
    %10 = tpu.iota {dimensions = array<i32: 0>} : vector<8x8xi32>
    %11 = vector.broadcast %3 : i32 to vector<8x8xi32>
    %12 = arith.addi %11, %10 : vector<8x8xi32>
    %13 = tpu.iota {dimensions = array<i32: 1>} : vector<8x8xi32>
    %14 = arith.cmpi sle, %13, %12 : vector<8x8xi32>
    %cst_3 = arith.constant 0xFF800000 : f32
    %15 = vector.broadcast %cst_3 : f32 to vector<8x8xf32>
    %16 = arith.select %14, %9, %15 : vector<8x8xi1>, vector<8x8xf32>
    %cst_4 = arith.constant dense<0xFF800000> : vector<8xf32>
    %17 = vector.multi_reduction <maximumf>, %16, %cst_4 [1] : vector<8x8xf32> to vector<8xf32>
    %18 = vector.shape_cast %17 : vector<8xf32> to vector<8x1xf32>
    %19 = vector.broadcast %18 : vector<8x1xf32> to vector<8x8xf32>
    %20 = arith.subf %16, %19 : vector<8x8xf32>
    %21 = math.exp %20 : vector<8x8xf32>
    %cst_5 = arith.constant dense<0.000000e+00> : vector<8xf32>
    %22 = vector.multi_reduction <add>, %21, %cst_5 [1] : vector<8x8xf32> to vector<8xf32>
    %23 = vector.shape_cast %22 : vector<8xf32> to vector<8x1xf32>
    %24 = tpu.reciprocal %23 : vector<8x1xf32> -> vector<8x1xf32>
    %25 = vector.broadcast %24 : vector<8x1xf32> to vector<8x8xf32>
    %26 = arith.mulf %21, %25 : vector<8x8xf32>
    %c0_6 = arith.constant 0 : index
    %c0_7 = arith.constant 0 : index
    %c0_8 = arith.constant 0 : index
    %27 = vector.load %arg5[%c0_6, %c0_7, %c0_8] : memref<1x8x8xf32, #tpu.memory_space<vmem>>, vector<1x8x8xf32>
    %28 = vector.shape_cast %27 : vector<1x8x8xf32> to vector<8x8xf32>
    %29 = vector.shape_cast %26 : vector<8x8xf32> to vector<1x8x8xf32>
    tpu.vector_store %arg5[%c0_6, %c0_7, %c0_8], %29 {strides = array<i32>} : memref<1x8x8xf32, #tpu.memory_space<vmem>>, vector<1x8x8xf32>,
    %cst_9 = arith.constant dense<0.000000e+00> : vector<8x128xf32>
    %30 = tpu.matmul %26, %8, %cst_9 {dimension_numbers = #tpu.dot_dimension_numbers<[1], [0], [0], [1], [0, 0, 1, 1], [], []>} : vector<8x8xf32>, vector<8x128xf32>, vector<8x128xf32> -> vector<8x128xf32>
    %c0_10 = arith.constant 0 : index
    %c0_11 = arith.constant 0 : index
    %c0_12 = arith.constant 0 : index
    %31 = vector.load %arg4[%c0_10, %c0_11, %c0_12] : memref<1x8x128xf32, #tpu.memory_space<vmem>>, vector<1x8x128xf32>
    %32 = vector.shape_cast %31 : vector<1x8x128xf32> to vector<8x128xf32>
    %33 = vector.shape_cast %30 : vector<8x128xf32> to vector<1x8x128xf32>
    tpu.vector_store %arg4[%c0_10, %c0_11, %c0_12], %33 {strides = array<i32>} : memref<1x8x128xf32, #tpu.memory_space<vmem>>, vector<1x8x128xf32>,
    return
  }
  func.func @transform_0(%arg0: i32, %arg1: i32) -> (i32, i32, i32) {
    %c0_i32 = arith.constant 0 : i32
    %c0_i32_0 = arith.constant 0 : i32
    %c0_i32_1 = arith.constant 0 : i32
    return %arg0, %c0_i32, %c0_i32_0 : i32, i32, i32
  }
  func.func @transform_1(%arg0: i32, %arg1: i32) -> (i32, i32) {
    %c0_i32 = arith.constant 0 : i32
    %c0_i32_0 = arith.constant 0 : i32
    %c0_i32_1 = arith.constant 0 : i32
    return %c0_i32, %c0_i32_0 : i32, i32
  }
  func.func @transform_2(%arg0: i32, %arg1: i32) -> (i32, i32, i32) {
    %c0_i32 = arith.constant 0 : i32
    %c0_i32_0 = arith.constant 0 : i32
    return %arg0, %arg1, %c0_i32 : i32, i32, i32
  }
  func.func @transform_3(%arg0: i32, %arg1: i32) -> (i32, i32, i32) {
    %c0_i32 = arith.constant 0 : i32
    %c0_i32_0 = arith.constant 0 : i32
    return %arg0, %arg1, %c0_i32 : i32, i32, i32
  }
}

</mosaic_0001>

<bundles_post_ra>
// kernel: tpu_custom_call.1
= control target key start
LH: loop header
LB: loop body
LE: loop exit
PB: predicated region body
PF: predicated region fallthrough
CT: control target
= control target key end

     0   :  { %9 = vsyncpa [#allocation4], 0  ;;  %s1339_s0 = inlined_call_operand.hbm [shape: f32[2,8,32], index: 0, kind: input, shape index: {}]   ;;  %s1340_s1 = inlined_call_operand.hbm [shape: f32[32,384], index: 1, kind: input, shape index: {}]   ;;  %s1341_s2 = inlined_call_operand.hbm [shape: f32[2,8,128], index: 2, kind: output, shape index: {0}]   ;;  %s1342_s3 = inlined_call_operand.hbm [shape: f32[2,8,8], index: 3, kind: output, shape index: {1}]  }
   0x1   :  { %11 = vsyncpa [#allocation4 + $0x1], 0 }
   0x2   :  { %12 = vsyncpa [#allocation7], 0 }
   0x3   :  { %13 = vsyncpa [#allocation5], 0 }
   0x4   :  { %15 = vsyncpa [#allocation5 + $0x1], 0 }
   0x5   :  { %16 = vsyncpa [#allocation10], 0 }
   0x6   :  { %18 = vsyncpa [#allocation10 + $0x1], 0  ;;  %s1084_s12 = smov 0   ;;  %s1086_s13 = smov 0  }
   0x7   :  { %s1088_s14 = smov 0   ;;  %s1090_s15 = smov 0  }
   0x8   :  { %s1092_s16 = smov 0   ;;  %s1094_s17 = smov 0  }
   0x9 LB: > { %s725_s18 = sadd.s32 4294967295, %s1053_s17   ;;  %s726_s19 = sadd.s32 4294967294, %s1053_s17   ;;  %s1053_s17 = sphi %s1094_s17, %s24_s17   ;;  %s1049_s16 = sphi %s1092_s16, %s1366_s16   ;;  %s1045_s15 = sphi %s1090_s15, %s1365_s15   ;;  %s1041_s14 = sphi %s1088_s14, %s1364_s14   ;;  %s1037_s13 = sphi %s1086_s13, %s1363_s13   ;;  %s1033_s12 = sphi %s1084_s12, %s1362_s12  }
   0xa   : > { %p56_p0 = scmp.ne.s32.totalorder %s1037_s13, %s1033_s12  ;;  %p1118_p1 = scmp.eq.s32.totalorder %s725_s18, 0 }
   0xb   : > { %p1122_p2 = scmp.eq.s32.totalorder %s725_s18, 1  ;;  %p109_p3 = scmp.eq.s32.totalorder %s726_s19, 1 }
   0xc   : > { %s1347_s20 = scalar_select %p1118_p1, 1, 0 }
   0xd   : > { %s1348_s21 = scalar_select %p1122_p2, 1, 0 }
   0xe   : > { %p1128_p4 = por %p1118_p1, %p56_p0  ;;  %p727_p5 = scmp.ge.s32.totalorder %s1053_s17, 1 }
   0xf   : > { %p1133_p6 = por %p109_p3, %p56_p0  ;;  %p144_p7 = scmp.lt.s32.totalorder %s1053_s17, 3 }
  0x10   : > { %s1349_s22 = scalar_select %p1128_p4, 1, 0 }
  0x11   : > { %s1350_s23 = scalar_select %p1133_p6, 1, 0 }
  0x12   : > { %p1138_p8 = pnand %p727_p5, %p144_p7  ;;  %s1055_s25 = smov [#allocation6]  }
  0x13   : > { %s156_s26 = sshll.u32 %s1055_s25, 4  ;;  %s36_s28 = sadd.s32 1, %s1049_s16  ;;  %s157_s26 = int_to_ptr.vmem [resolvable:$true] %s156_s26 }
  0x14   : > { %s1351_s24 = scalar_select %p1138_p8, 1, 0 }
  0x15   : > { %p800_p9 = pneg %p1138_p8  ;;  %s877_s4 = scalar_lea.hbm %s1340_s1, 1536 }
  0x16   : > { %p878_p12 = scmp.ne.s32.totalorder %s1340_s1, %s877_s4  ;;  %p884_p5 = scmp.lt.u32.totalorder %s877_s4, %s1340_s1 }
  0x17   : > { %p1147_p11 = pnand %p800_p9, %p1118_p1 }
  0x19   : > { %p879_p13 = pneg %p1147_p11 }
  0x1b   : > { %p880_p0 = pnand %p879_p13, %p878_p12 }
  0x1d   : > { %p881_p3 = pneg %p880_p0 }
  0x1f   : > { %p886_p7 = pnand %p884_p5, %p881_p3 }
  0x21   : > { %889 = shalt.err (!%p886_p7)
}
  0x22   : > { %s890_s9 = scalar_lea.vmem %s157_s26, 1536  ;;  %p898_p1 = scmp.lt.s32.totalorder %s157_s26, %s157_s26 }
  0x23   : > { %p891_p9 = scmp.ne.s32.totalorder %s157_s26, %s890_s9  ;;  %p899_p4 = scmp.lt.s32.totalorder %s890_s9, %s890_s9 }
  0x25   : > { %p893_p10 = pnand %p891_p9, %p879_p13  ;;  %p900_p8 = por %p899_p4, %p898_p1 }
  0x27   : > { %p894_p6 = pneg %p893_p10 }
  0x29   : > { %p901_p2 = pnand %p900_p8, %p894_p6 }
  0x2b   : > { %904 = shalt.err (!%p901_p2)
}
  0x2c   : > { %s1056_s10 = smov 384   ;;  %s1057_s11 = smov 24  }
  0x2d   : > { %803 = dma.hbm_to_vmem [thread:$0]  (!%p1147_p11), %s1340_s1, 1536, %s157_s26, [#allocation7], %s1056_s10, %s1056_s10, %s1057_s11  }
  0x2e   : > { %p38_p1 = scmp.ge.s32.totalorder %s36_s28, 2  ;;  %s43_s25 = sadd.s32 1, %s1041_s14 }
  0x2f   : > { %p50_p2 = scmp.ne.s32.totalorder %s1041_s14, %s1037_s13  ;;  %p51_p4 = scmp.eq.s32.totalorder %s1053_s17, 0 }
  0x30   : > { %s1368_s28 = smov (%p38_p1, %s36_s28), 0  ;;  %p1354_p8 = scmp.ne.s32.totalorder %s1348_s21, 0 }
  0x31   : > { %p1174_p6 = por %p51_p4, %p50_p2  ;;  %s40_s27 = ssub.s32 %s1049_s16, %s1368_s28 }
  0x32   : > { %p1180_p10 = por %p1354_p8, %p50_p2  ;;  %p816_p12 = scmp.lt.s32.totalorder %s1053_s17, 2 }
  0x33   : > { %p41_p11 = scmp.eq.s32.totalorder %s40_s27, 0  ;;  %s170_s26 = sand.u32 1, %s1041_s14  }
  0x34   : > { %s730_s4 = sshll.u32 %s170_s26, 3  ;;  %s731_s6 = sshll.u32 %s1049_s16, 7 }
  0x35   : > { %s1189_s5 = scalar_select %p41_p11, %s1041_s14, %s43_s25  }
  0x36   : > { %s1195_s9 = scalar_lea.hbm %s1339_s0, %s731_s6  ;;  %s174_s21 = scalar_lea.vmem [#allocation3], %s730_s4 }
  0x37   : > { %s181_s10 = sshll.u32 %s174_s21, 4  ;;  %p1201_p13 = pnand %p816_p12, %p1174_p6  ;;  %s1197_s10 = int_to_ptr.vmem [resolvable:$true] %s181_s10 }
  0x38   : > { %s171_s18 = scalar_lea.sflag [#allocation4], %s170_s26  ;;  %s905_s19 = scalar_lea.hbm %s1195_s9, 128 }
  0x39   : > { %p906_p0 = scmp.ne.s32.totalorder %s1195_s9, %s905_s19  ;;  %p907_p3 = pneg %p1201_p13 }
  0x3a   : > { %s910_s4 = scalar_lea.hbm %s1339_s0, 256  ;;  %p911_p9 = scmp.lt.u32.totalorder %s1195_s9, %s1339_s0 }
  0x3b   : > { %p908_p5 = pnand %p907_p3, %p906_p0  ;;  %p912_p1 = scmp.lt.u32.totalorder %s910_s4, %s905_s19 }
  0x3c   : > { %p914_p4 = scmp.lt.u32.totalorder %s905_s19, %s1195_s9 }
  0x3d   : > { %p909_p7 = pneg %p908_p5  ;;  %p913_p2 = por %p912_p1, %p911_p9 }
  0x3f   : > { %p915_p6 = por %p914_p4, %p913_p2 }
  0x41   : > { %p916_p8 = pnand %p915_p6, %p909_p7 }
  0x43   : > { %919 = shalt.err (!%p916_p8)
}
  0x44   : > { %s920_s26 = scalar_lea.vmem %s1197_s10, 128  ;;  %s1058_s7 = smov [#allocation3]  }
  0x45   : > { %p921_p12 = scmp.ne.s32.totalorder %s1197_s10, %s920_s26  ;;  %s925_s8 = sshll.u32 %s1058_s7, 4  ;;  %s926_s8 = int_to_ptr.vmem [resolvable:$false] %s925_s8 }
  0x46   : > { %s927_s21 = scalar_lea.vmem %s926_s8, 256  ;;  %p928_p5 = scmp.lt.s32.totalorder %s1197_s10, %s926_s8 }
  0x47   : > { %p923_p11 = pnand %p921_p12, %p907_p3  ;;  %p929_p9 = scmp.lt.s32.totalorder %s927_s21, %s920_s26 }
  0x49   : > { %p924_p0 = pneg %p923_p11  ;;  %p930_p1 = por %p929_p9, %p928_p5 }
  0x4b   : > { %p931_p2 = pnand %p930_p1, %p924_p0 }
  0x4d   : > { %934 = shalt.err (!%p931_p2)
}
  0x4e   : > { %807 = dma.hbm_to_vmem [thread:$0]  (!%p1201_p13), %s1195_s9, 128, %s1197_s10, %s171_s18  }
  0x4f   : > { %p1357_p7 = scmp.ne.s32.totalorder %s1351_s24, 0 }
  0x50   : > { %s1233_s19 = sand.u32 (!%p1357_p7), 1, %s1037_s13   ;;  %p1358_p3 = scmp.ne.s32.totalorder (!%p1357_p7), %s1349_s22, 0 }
  0x51   : > { %190 = sbr.rel (%p1357_p7) target bundleno = 1072 (0x430), region = 28  ;;  %s1236_s25 = sshll.u32 (!%p1357_p7), %s1233_s19, 3 }
  0x52   : > { %s193_s27 = scalar_lea.sflag (!%p1357_p7), [#allocation4], %s1233_s19  ;;  %s196_s4 = scalar_lea.vmem (!%p1357_p7), [#allocation3], %s1236_s25 }
  0x58   : > { %1016 = dma.done.wait (%p1358_p3), %s193_s27, 128  }
  0x59   : > { %1018 = vsyncadd (%p1358_p3), %s193_s27, 4294967168  ;;  %p1359_p13 = scmp.ne.s32.totalorder %s1347_s20, 0 }
  0x5b   : > { %1020 = dma.done.wait (%p1359_p13), [#allocation7], 1536  }
  0x5c   : > { %1022 = vsyncadd (%p1359_p13), [#allocation7], 4294965760  ;;  %v1059_v0 = vmov 0.0   ;;  %v234_v1 = vld [vmem:[#allocation6 + $0x8] sm:$0xff]  ;;  %v237_v2 = vld [vmem:[#allocation6 + $0x20] sm:$0xff]  ;;  %vm245_vm0 = vcmask 261120   ;;  %v472_v23 = vlaneseq }
  0x5d   : > { %313 = vmatprep.mubr.f32.mxu0 %v1059_v0  ;;  %v233_v3 = vld [vmem:[#allocation6] sm:$0xff]  ;;  %v776_v4 = vpack.c.bf16 %v237_v2, %v234_v1  ;;  %v236_v5 = vld [vmem:[#allocation6 + $0x18] sm:$0xff]  ;;  %v243_v7 = vld [vmem:[#allocation6 + $0x50] sm:$0xff]  ;;  %vm1060_vm1 = vmmov 0   ;;  %v1061_v19 = vmov 0.0|0.0   ;;  %vm480_vm3 = vcmask 64512  }
  0x5e   : > { %v240_v6 = vld [vmem:[#allocation6 + $0x38] sm:$0xff]  ;;  %v778_v8 = vpack.c.bf16 %v236_v5, %v233_v3  ;;  %v239_v10 = vld [vmem:[#allocation6 + $0x30] sm:$0xff]  ;;  %v242_v11 = vld [vmem:[#allocation6 + $0x48] sm:$0xff]  ;;  %763 = vmatprep.mubr.msk.f32.mxu1 %vm1060_vm1, %v1059_v0  ;;  %784 = vmatprep.subr.bf16.mxu1 %v1061_v19  ;;  %v473_v24 = vshrl.u32 %v472_v23, 7  ;;  %v477_v25 = vand.u32 127, %v472_v23  ;;  %s227_s20 = scalar_lea.vmem [#allocation9], %s1236_s25 }
  0x5f   : > { %v780_v9 = vpack.c.bf16 %v243_v7, %v240_v6  ;;  %777 = vmatprep.subr.bf16.mxu0 %v776_v4  ;;  %v782_v12 = vpack.c.bf16 %v242_v11, %v239_v10  ;;  %v232_v13 = vld [vmem:[%s196_s4] sm:$0xff]  ;;  %v238_v17 = vld [vmem:[#allocation6 + $0x28] sm:$0xff]  ;;  %v241_v18 = vld [vmem:[#allocation6 + $0x40] sm:$0xff]  ;;  %s742_s22 = sshll.u32 %s1045_s15, 7  ;;  %s601_s11 = sshll.u32 %s227_s20, 4  ;;  %s602_s11 = int_to_ptr.vmem [resolvable:$true] %s601_s11 }
  0x60   : > { %779 = vmatpush1.bf16.msra.mxu0 %v778_v8  ;;  %v235_v16 = vld [vmem:[#allocation6 + $0x10] sm:$0xff]  ;;  %v244_v21 = vld [vmem:[#allocation6 + $0x58] sm:$0xff]  ;;  %vm478_vm2 = vcmp.le.s32.totalorder %v477_v25, %v473_v24  ;;  %s1264_s10 = scalar_lea.hbm %s1342_s3, %s742_s22  ;;  %s573_s18 = scalar_lea.sflag [#allocation10], %s1233_s19 }
  0x61   : > { %781 = vmatprep.subr.bf16.mxu0 %v780_v9  ;;  %v785_v20 = vpack.c.bf16 %v238_v17, %v235_v16  ;;  %v788_v22 = vpack.c.bf16 %v244_v21, %v241_v18  ;;  %s935_s29 = scalar_lea.vmem %s602_s11, 128  ;;  %s1062_s6 = smov [#allocation9]  }
  0x62   : > { %p936_p4 = scmp.ne.s32.totalorder %s602_s11, %s935_s29  ;;  %s939_s26 = sshll.u32 %s1062_s6, 4  ;;  %s940_s26 = int_to_ptr.vmem [resolvable:$false] %s939_s26 }
  0x63   : > { %786 = vmatpush3.bf16.msra.mxu1 %v785_v20  ;;  %s941_s7 = scalar_lea.vmem %s940_s26, 256  ;;  %p942_p12 = scmp.lt.s32.totalorder %s602_s11, %s940_s26 }
  0x64   : > { %783 = vmatpush1.bf16.msra.mxu0 %v782_v12  ;;  %787 = vmatprep.subr.bf16.mxu1 %v1061_v19  ;;  %p937_p6 = pnand %p936_p4, %p1180_p10  ;;  %p943_p11 = scmp.lt.s32.totalorder %s941_s7, %s935_s29 }
  0x65   : > { %766 = vmatprep.subr.mxu0 %v1059_v0 }
  0x66   : > { %p938_p8 = pneg %p937_p6  ;;  %p944_p0 = por %p943_p11, %p942_p12 }
  0x67   : > { %737 = vmatmul.mubr.msk.f32.vlgmr.msra.gmra.mrb[0].mxu0 %vm245_vm0, %v232_v13  ;;  %789 = vmatpush3.bf16.msra.mxu1 %v788_v22 }
  0x68   : > { %768 = vmatprep.mubr.msk.f32.mxu0 %vm1060_vm1, %v1059_v0  ;;  %771 = vmatprep.subr.mxu1 %v1059_v0  ;;  %p945_p5 = pnand %p944_p0, %p938_p8 }
  0x6a   : > { %764 = vmatmul.mubr.msk.f32.vlgmr.msra.gmra.mrb[0].mxu1 %vm245_vm0, %v232_v13 }
  0x6b   : > { %773 = vmatprep.mubr.msk.f32.mxu1 %vm1060_vm1, %v1059_v0 }
 0x13a   : > { %v315_v14 = vpop.f32.mrb[0].mxu0 }
 0x13b   : > { %v317_v15 = vpop.f32.mrb[1].mxu0 }
 0x13c   : > { %767 = vmatpush3.xpose.msra.mxu0 %v317_v15 }
 0x13d   : > { %v386_v35 = vpop.f32.mrb[0].mxu1 }
 0x13e   : > { %v765_v36 = vpop.f32.mrb[1].mxu1  ;;  %772 = vmatpush3.msra.mxu1 %v386_v35 }
 0x13f   : > { %769 = vmatmul.mubr.f32.vlgmr.msra.gmra.mrb[2].mxu0 %v315_v14 }
 0x212   : > { %v468_v26 = vpop.f32.mrb[2].mxu0 }
 0x213   : > { %v479_v27 = vsel %vm478_vm2, %v468_v26, -inf  ;;  %v770_v28 = vpop.f32.mrb[3].mxu0 }
 0x214   : > { %v481_v29 = vsel %vm480_vm3, %v479_v27, -inf }
 0x215   : > { %482 = vmax.xlane.f32.xlu0 %v481_v29 }
 0x2a2   : > { %v483_v30 = vpop.xlane.xlu0 %482 }
 0x2a3   : > { %v484_v31 = vsub.f32 %v479_v27, %v483_v30 }
 0x2a5   : > { %v485_v32 = vmul.f32 1.442695, %v484_v31 }
 0x2a7   : > { %873 = vpow2.f32 %v485_v32 }
 0x2b1   : > { %v874_v33 = vpop.eup %873 }
 0x2b2   : > { %v487_v34 = vsel %vm480_vm3, %v874_v33, 0.0 }
 0x2b3   : > { %488 = vadd.xlane.f32.xlu0 %v487_v34 }
 0x340   : > { %v489_v37 = vpop.xlane.xlu0 %488 }
 0x341   : > { %875 = vrcp.f32 %v489_v37 }
 0x34b   : > { %v876_v38 = vpop.eup %875 }
 0x34c   : > { %v491_v39 = vmul.f32 %v876_v38, %v874_v33 }
 0x34e   : > { %774 = vmatmul.mubr.msk.f32.vlgmr.msra.gmra.mrb[2].mxu1 %vm480_vm3, %v491_v39  ;;  %492 = vst.msk [vmem:[%s227_s20] sm:$0xff] %vm480_vm3, %v491_v39 }
 0x34f   : > { %948 = shalt.err (!%p945_p5)
}
 0x350   : > { %s949_s8 = scalar_lea.hbm %s1264_s10, 128  ;;  %s953_s4 = scalar_lea.hbm %s1342_s3, 256 }
 0x351   : > { %p950_p9 = scmp.ne.s32.totalorder %s1264_s10, %s949_s8  ;;  %p954_p7 = scmp.lt.u32.totalorder %s1264_s10, %s1342_s3 }
 0x352   : > { %p955_p3 = scmp.lt.u32.totalorder %s953_s4, %s949_s8  ;;  %p957_p4 = scmp.lt.u32.totalorder %s949_s8, %s1264_s10 }
 0x353   : > { %p951_p1 = pnand %p950_p9, %p1180_p10 }
 0x354   : > { %p956_p13 = por %p955_p3, %p954_p7 }
 0x355   : > { %p952_p2 = pneg %p951_p1 }
 0x356   : > { %p958_p6 = por %p957_p4, %p956_p13 }
 0x358   : > { %p959_p8 = pnand %p958_p6, %p952_p2 }
 0x35a   : > { %962 = shalt.err (!%p959_p8)
}
 0x35b   : > { %797 = dma.vmem_to_hbm [thread:$0]  (%p1180_p10), %s602_s11, 128, %s1264_s10, %s573_s18  }
 0x35c   : > { %s220_s9 = scalar_lea.vmem [#allocation8], %s1236_s25  ;;  %s1292_s7 = scalar_lea.hbm %s1341_s2, %s742_s22 }
 0x35d   : > { %s587_s29 = sshll.u32 %s220_s9, 4  ;;  %s568_s8 = scalar_lea.sflag [#allocation5], %s1233_s19  ;;  %s1285_s29 = int_to_ptr.vmem [resolvable:$true] %s587_s29 }
 0x35e   : > { %s963_s21 = scalar_lea.vmem %s1285_s29, 128  ;;  %s1063_s25 = smov [#allocation8]  }
 0x35f   : > { %p964_p12 = scmp.ne.s32.totalorder %s1285_s29, %s963_s21  ;;  %s967_s10 = sshll.u32 %s1063_s25, 4  ;;  %s968_s10 = int_to_ptr.vmem [resolvable:$false] %s967_s10 }
 0x360   : > { %s969_s15 = scalar_lea.vmem %s968_s10, 256  ;;  %p970_p5 = scmp.lt.s32.totalorder %s1285_s29, %s968_s10 }
 0x361   : > { %p965_p11 = pnand %p964_p12, %p1180_p10  ;;  %p971_p9 = scmp.lt.s32.totalorder %s969_s15, %s963_s21 }
 0x363   : > { %p966_p0 = pneg %p965_p11  ;;  %p972_p1 = por %p971_p9, %p970_p5 }
 0x365   : > { %p973_p2 = pnand %p972_p1, %p966_p0 }
 0x421   : > { %v562_v40 = vpop.f32.mrb[2].mxu1 }
 0x422   : > { %566 = vst [vmem:[%s220_s9] sm:$0xff] %v562_v40  ;;  %v775_v41 = vpop.f32.mrb[3].mxu1 }
 0x423   : > { %976 = shalt.err (!%p973_p2)
}
 0x424   : > { %s977_s19 = scalar_lea.hbm %s1292_s7, 128  ;;  %s981_s18 = scalar_lea.hbm %s1341_s2, 256 }
 0x425   : > { %p978_p7 = scmp.ne.s32.totalorder %s1292_s7, %s977_s19  ;;  %p982_p4 = scmp.lt.u32.totalorder %s1292_s7, %s1341_s2 }
 0x426   : > { %p983_p6 = scmp.lt.u32.totalorder %s981_s18, %s977_s19  ;;  %p985_p12 = scmp.lt.u32.totalorder %s977_s19, %s1292_s7 }
 0x427   : > { %p979_p3 = pnand %p978_p7, %p1180_p10 }
 0x428   : > { %p984_p8 = por %p983_p6, %p982_p4 }
 0x429   : > { %p980_p13 = pneg %p979_p3 }
 0x42a   : > { %p986_p11 = por %p985_p12, %p984_p8 }
 0x42c   : > { %p987_p0 = pnand %p986_p11, %p980_p13 }
 0x42e   : > { %990 = shalt.err (!%p987_p0)
}
 0x42f   : > { %796 = dma.vmem_to_hbm [thread:$0]  (%p1180_p10), %s1285_s29, 128, %s1292_s7, %s568_s8  }
 0x430 PF: > { %s613_s20 = sand.u32 1, %s1033_s12   ;;  %p1360_p5 = scmp.ne.s32.totalorder %s1350_s23, 0 }
 0x431   : > { %p1361_p9 = scmp.ge.s32.totalorder %s1053_s17, 2  ;;  %s614_s24 = scalar_lea.sflag [#allocation5], %s613_s20 }
 0x433   : > { %p809_p1 = pnand %p1361_p9, %p1360_p5 }
 0x435   : > { %1024 = dma.done.wait (!%p809_p1), %s614_s24, 128  }
 0x436   : > { %1026 = vsyncadd (!%p809_p1), %s614_s24, 4294967168  ;;  %s623_s9 = scalar_lea.sflag [#allocation10], %s613_s20 }
 0x437   : > { %1028 = dma.done.wait (!%p809_p1), %s623_s9, 128  }
 0x438   : > { %1030 = vsyncadd (!%p809_p1), %s623_s9, 4294967168  ;;  %s24_s17 = sadd.s32 1, %s1053_s17   ;;  %s1362_s12 = smov %s1037_s13 }
 0x439   : > { %p21_p2 = scmp.ge.s32.totalorder %s24_s17, 4   ;;  %s1363_s13 = smov %s1041_s14 }
 0x43a   : > { %s1364_s14 = smov %s1189_s5  ;;  %s1365_s15 = smov %s1049_s16 }
 0x43b   : > { %s1366_s16 = smov %s1368_s28  ;;  %23 = sbr.rel (!%p21_p2) target bundleno = 9 (0x9), region = 99 }
 0x442   :  { %628 = vsyncpa [#allocation4], 1 }
 0x443   :  { %630 = vsyncpa [#allocation4 + $0x1], 1 }
 0x444   :  { %631 = vsyncpa [#allocation7], 1 }
 0x445   :  { %632 = vsyncpa [#allocation5], 1 }
 0x446   :  { %634 = vsyncpa [#allocation5 + $0x1], 1 }
 0x447   :  { %635 = vsyncpa [#allocation10], 1 }
 0x448   :  { %637 = vsyncpa [#allocation10 + $0x1], 1 }

</bundles_post_ra>
